<compile_context>
chip_gen: v7x
topology: tpu7x:2x2x1
jax: 0.10.0
libtpu: 0.0.40
codegen_flags: <defaults>
</compile_context>

<pallas_src>
import numpy as np
import jax
import jax.numpy as jnp
from jax.experimental import pallas as pl
from jax.experimental.pallas import tpu as pltpu


# ----------------------------- model hyperparams -----------------------------
LAG_ORDER = 16          # opts.lag_order
INPUT_DIM = 4           # opts.input_dim  (Cin)
OUTPUT_DIM = 6          # opts.H
CHANNEL_SIZE = 8        # opts.channel_size (Cout)
P_SIZE = 3              # pooling window, stride 1
HW_LAMBDA = 0.5

TIME_STEPS = LAG_ORDER - INPUT_DIM + 1                       # 13
KERNEL_SIZE = max(2, -(-LAG_ORDER // 4))                     # ceil(16/4) = 4
L_OUT = TIME_STEPS - KERNEL_SIZE + 1                         # 10 (conv output len)
L_POOL = L_OUT - P_SIZE + 1                                  # 8  (pooled len)
READOUT_SIZE = CHANNEL_SIZE * (TIME_STEPS - KERNEL_SIZE - P_SIZE + 2)  # 64

BATCH = 2

# kernel layout constants
X_LANES = 64            # Cin*T = 52 zero-padded to an 8-aligned contraction width
OUT_LANES = 128         # H = 6 zero-padded to a dense 128-lane output tile
K_ALIGN = 64            # aligned contraction rows inside both weight slabs
ROW_BLOCK = 256         # batch rows per grid step when batching


# --------------------------- one-time weight setup ----------------------------
def prepare_params(w_conv, b_conv, w_readout, b_readout):
    """One-time parameter rearrangement (hoisted out of the per-call forward path).

    w_conv    : (Cout, Cin, K)   PyTorch Conv1d weight
    b_conv    : (Cout,)          PyTorch Conv1d bias
    w_readout : (H, Cout*Lpool)  PyTorch Linear weight, flat index = c*Lpool + l
    b_readout : (H,)             PyTorch Linear bias

    Returns two lane-padded slabs (bias folded in as the last row each):
      conv_slab (65, 128): conv_slab[i*T + s, t*Cout + c] = w[c, i, s-t] (rows 0:52),
                           conv_slab[64, t*Cout + c]       = b_conv[c]
      ro_slab   (65, 128): ro_slab[l*Cout + c, h] = w_ro[h, c*Lpool + l] (rows 0:64),
                           ro_slab[64, h]         = b_ro[h]
    """
    w_conv = np.asarray(w_conv, np.float32)
    b_conv = np.asarray(b_conv, np.float32)
    w_ro = np.asarray(w_readout, np.float32)
    b_ro = np.asarray(b_readout, np.float32)

    conv_slab = np.zeros((K_ALIGN + 1, OUT_LANES), np.float32)
    for t in range(L_OUT):
        for k in range(KERNEL_SIZE):
            s = t + k
            for i in range(INPUT_DIM):
                conv_slab[i * TIME_STEPS + s,
                          t * CHANNEL_SIZE:(t + 1) * CHANNEL_SIZE] = w_conv[:, i, k]
    conv_slab[K_ALIGN, 0:L_OUT * CHANNEL_SIZE] = np.tile(b_conv, L_OUT)

    ro_slab = np.zeros((K_ALIGN + 1, OUT_LANES), np.float32)
    wro_t = np.transpose(
        w_ro.reshape(OUTPUT_DIM, CHANNEL_SIZE, L_POOL), (2, 1, 0)
    ).reshape(L_POOL * CHANNEL_SIZE, OUTPUT_DIM)            # rows in l*Cout + c order
    ro_slab[0:L_POOL * CHANNEL_SIZE, 0:OUTPUT_DIM] = wro_t
    ro_slab[K_ALIGN, 0:OUTPUT_DIM] = b_ro

    return jnp.asarray(conv_slab), jnp.asarray(ro_slab)


# --------------------------------- kernel ------------------------------------
def stoc_cnn_kernel(x_ref, conv_ref, ro_ref, out_ref):
    """One batch block.

    x_ref    : (tb, 64)   x.reshape(B, Cin*T) zero-padded to 64 lanes
    conv_ref : (65, 128)  banded Conv1d weight (rows 0:52) + conv bias (row 64)
    ro_ref   : (65, 128)  readout weight in l*Cout+c row order (rows 0:64) + bias (row 64)
    out_ref  : (tb, 128)  prediction, lanes 0:OUTPUT_DIM valid (lane-dense tile)
    """
    # ---- Conv1d (every tap, position, channel): ONE MXU matmul + folded bias row ----
    fm = jnp.dot(x_ref[...], conv_ref[0:K_ALIGN, :],
                 preferred_element_type=jnp.float32)          # (tb, 128), cols 0:80 valid
    fm = jax.nn.sigmoid(fm + conv_ref[K_ALIGN:K_ALIGN + 1, :])  # EUP sigmoid, f32

    # ---- stride-1 max pool over time: lane-offset slices 0/8/16 (XLU + VPU max) ----
    pooled = jnp.maximum(jnp.maximum(fm[:, 0:64], fm[:, 8:72]), fm[:, 16:80])  # (tb, 64)

    # ---- readout Linear: ONE MXU matmul into a dense 128-lane tile + folded bias ----
    out_ref[...] = (jnp.dot(pooled, ro_ref[0:K_ALIGN, :],
                            preferred_element_type=jnp.float32)
                    + ro_ref[K_ALIGN:K_ALIGN + 1, :])


# --------------------------------- wrapper -----------------------------------
@jax.jit
def stoc_cnn_forward(x_ncw, conv_slab, ro_slab):
    """x_ncw: (B, Cin, T) -- PyTorch NCW layout, as fed to Conv1d. Returns (B, H)."""
    B = x_ncw.shape[0]
    x2d = x_ncw.reshape(B, INPUT_DIM * TIME_STEPS)            # free reshape, natural order

    if B > ROW_BLOCK:
        tb = ROW_BLOCK
        b_pad = pl.cdiv(B, tb) * tb
    else:
        tb = B                                                # single block, no padding rows
        b_pad = B
    nblk = b_pad // tb

    # one cheap pad: batch rows up to the block multiple, lanes 52 -> 64 (zeros)
    x_pad = jnp.pad(x2d, ((0, b_pad - B), (0, X_LANES - INPUT_DIM * TIME_STEPS)))

    out = pl.pallas_call(
        stoc_cnn_kernel,
        out_shape=jax.ShapeDtypeStruct((b_pad, OUT_LANES), jnp.float32),
        grid=(nblk,),
        in_specs=[
            pl.BlockSpec((tb, X_LANES), lambda i: (i, 0)),
            pl.BlockSpec(conv_slab.shape, lambda i: (0, 0)),  # weights stay VMEM-resident
            pl.BlockSpec(ro_slab.shape, lambda i: (0, 0)),    # weights stay VMEM-resident
        ],
        out_specs=pl.BlockSpec((tb, OUT_LANES), lambda i: (i, 0)),
        compiler_params=pltpu.CompilerParams(
            dimension_semantics=("parallel",) if nblk > 1 else ("arbitrary",)),
    )(x_pad, conv_slab, ro_slab)

    return out[:B, :OUTPUT_DIM]                               # (B, H)


# ------------------------------ pure-JAX reference ---------------------------
def stoc_cnn_reference(x_ncw, w_conv, b_conv, w_readout, b_readout):
    B = x_ncw.shape[0]
    fm = jnp.zeros((B, CHANNEL_SIZE, L_OUT), jnp.float32)
    for k in range(KERNEL_SIZE):
        fm = fm + jnp.einsum('bcl,oc->bol',
                             x_ncw[:, :, k:k + L_OUT], w_conv[:, :, k])
    fm = fm + b_conv[None, :, None]
    fm = jax.nn.sigmoid(fm)
    pooled = fm[:, :, 0:L_POOL]
    for j in range(1, P_SIZE):
        pooled = jnp.maximum(pooled, fm[:, :, j:j + L_POOL])
    flat = pooled.reshape(B, READOUT_SIZE)
    return flat @ w_readout.T + b_readout[None, :]


# ---------------------------------- main --------------------------------------
if __name__ == "__main__":
    key = jax.random.PRNGKey(0)
    k_x, k_wc, k_bc, k_wr, k_br, k_xl = jax.random.split(key, 6)

    # stochastic conv weights, uniform in (-hw_lambda, hw_lambda) as in cnnLayer
    w_conv = jax.random.uniform(k_wc, (CHANNEL_SIZE, INPUT_DIM, KERNEL_SIZE),
                                jnp.float32, -HW_LAMBDA, HW_LAMBDA)
    b_conv = jax.random.uniform(k_bc, (CHANNEL_SIZE,), jnp.float32,
                                -HW_LAMBDA, HW_LAMBDA)

    # readout Linear(readout_size, H)
    bound = 1.0 / np.sqrt(READOUT_SIZE)
    w_readout = jax.random.uniform(k_wr, (OUTPUT_DIM, READOUT_SIZE),
                                   jnp.float32, -bound, bound)
    b_readout = jax.random.uniform(k_br, (OUTPUT_DIM,), jnp.float32,
                                   -bound, bound)

    # one-time parameter rearrangement (NOT part of the per-call forward path)
    conv_slab, ro_slab = prepare_params(w_conv, b_conv, w_readout, b_readout)

    # ---- small batch (module default): single block, weights + data in one shot ----
    x = jax.random.normal(k_x, (BATCH, INPUT_DIM, TIME_STEPS), jnp.float32)
    pred = jax.block_until_ready(stoc_cnn_forward(x, conv_slab, ro_slab))
    ref = jax.block_until_ready(
        stoc_cnn_reference(x, w_conv, b_conv, w_readout, b_readout))
    assert pred.shape == (BATCH, OUTPUT_DIM)
    np.testing.assert_allclose(np.asarray(pred), np.asarray(ref),
                               rtol=1e-3, atol=1e-3)

    # ---- larger batch: exercises the amortized grid path (256-row blocks, resident
    #      weights, "parallel" batch axis so v7x uses both TensorCores) ----
    B_LARGE = 300
    xl = jax.random.normal(k_xl, (B_LARGE, INPUT_DIM, TIME_STEPS), jnp.float32)
    pred_l = jax.block_until_ready(stoc_cnn_forward(xl, conv_slab, ro_slab))
    ref_l = jax.block_until_ready(
        stoc_cnn_reference(xl, w_conv, b_conv, w_readout, b_readout))
    assert pred_l.shape == (B_LARGE, OUTPUT_DIM)
    np.testing.assert_allclose(np.asarray(pred_l), np.asarray(ref_l),
                               rtol=1e-3, atol=1e-3)

    print("KERNEL_OK")
</pallas_src>

<mosaic_0001>
module attributes {stable_mosaic.version = 11 : i64} {
  func.func @stoc_cnn_kernel(%arg0: i32, %arg1: memref<2x64xf32, #tpu.memory_space<vmem>>, %arg2: memref<65x128xf32, #tpu.memory_space<vmem>>, %arg3: memref<65x128xf32, #tpu.memory_space<vmem>>, %arg4: memref<2x128xf32, #tpu.memory_space<vmem>>) attributes {dimension_semantics = [#tpu.dimension_semantics<arbitrary>], iteration_bounds = array<i64: 1>, scalar_prefetch = 0 : i64, scratch_operands = 0 : i64, tpu.core_type = #tpu.core_type<tc>, window_params = [{transform_indices = @transform_0, window_bounds = array<i64: 2, 64>}, {pipeline_mode = #tpu.pipeline_mode<synchronous>, transform_indices = @transform_1, window_bounds = array<i64: 65, 128>}, {pipeline_mode = #tpu.pipeline_mode<synchronous>, transform_indices = @transform_2, window_bounds = array<i64: 65, 128>}, {transform_indices = @transform_3, window_bounds = array<i64: 2, 128>}]} {
    %c0 = arith.constant 0 : index
    %c0_0 = arith.constant 0 : index
    %0 = vector.load %arg1[%c0, %c0_0] : memref<2x64xf32, #tpu.memory_space<vmem>>, vector<2x64xf32>
    %c0_1 = arith.constant 0 : index
    %c0_2 = arith.constant 0 : index
    %1 = vector.load %arg2[%c0_1, %c0_2] : memref<65x128xf32, #tpu.memory_space<vmem>>, vector<64x128xf32>
    %cst = arith.constant dense<0.000000e+00> : vector<2x128xf32>
    %2 = tpu.matmul %0, %1, %cst {dimension_numbers = #tpu.dot_dimension_numbers<[1], [0], [0], [1], [0, 0, 1, 1], [], []>} : vector<2x64xf32>, vector<64x128xf32>, vector<2x128xf32> -> vector<2x128xf32>
    %c64 = arith.constant 64 : index
    %c0_3 = arith.constant 0 : index
    %3 = vector.load %arg2[%c64, %c0_3] : memref<65x128xf32, #tpu.memory_space<vmem>>, vector<1x128xf32>
    %4 = vector.broadcast %3 : vector<1x128xf32> to vector<2x128xf32>
    %5 = arith.addf %2, %4 : vector<2x128xf32>
    %6 = arith.negf %5 : vector<2x128xf32>
    %7 = math.exp %6 : vector<2x128xf32>
    %cst_4 = arith.constant 1.000000e+00 : f32
    %8 = vector.broadcast %cst_4 : f32 to vector<2x128xf32>
    %9 = arith.addf %8, %7 : vector<2x128xf32>
    %10 = arith.divf %8, %9 : vector<2x128xf32>
    %11 = vector.extract_strided_slice %10 {offsets = [0, 0], sizes = [2, 64], strides = [1, 1]} : vector<2x128xf32> to vector<2x64xf32>
    %12 = vector.extract_strided_slice %10 {offsets = [0, 8], sizes = [2, 64], strides = [1, 1]} : vector<2x128xf32> to vector<2x64xf32>
    %13 = arith.maximumf %11, %12 : vector<2x64xf32>
    %14 = vector.extract_strided_slice %10 {offsets = [0, 16], sizes = [2, 64], strides = [1, 1]} : vector<2x128xf32> to vector<2x64xf32>
    %15 = arith.maximumf %13, %14 : vector<2x64xf32>
    %c0_5 = arith.constant 0 : index
    %c0_6 = arith.constant 0 : index
    %16 = vector.load %arg3[%c0_5, %c0_6] : memref<65x128xf32, #tpu.memory_space<vmem>>, vector<64x128xf32>
    %cst_7 = arith.constant dense<0.000000e+00> : vector<2x128xf32>
    %17 = tpu.matmul %15, %16, %cst_7 {dimension_numbers = #tpu.dot_dimension_numbers<[1], [0], [0], [1], [0, 0, 1, 1], [], []>} : vector<2x64xf32>, vector<64x128xf32>, vector<2x128xf32> -> vector<2x128xf32>
    %c64_8 = arith.constant 64 : index
    %c0_9 = arith.constant 0 : index
    %18 = vector.load %arg3[%c64_8, %c0_9] : memref<65x128xf32, #tpu.memory_space<vmem>>, vector<1x128xf32>
    %19 = vector.broadcast %18 : vector<1x128xf32> to vector<2x128xf32>
    %20 = arith.addf %17, %19 : vector<2x128xf32>
    %c0_10 = arith.constant 0 : index
    %c0_11 = arith.constant 0 : index
    %21 = vector.load %arg4[%c0_10, %c0_11] : memref<2x128xf32, #tpu.memory_space<vmem>>, vector<2x128xf32>
    tpu.vector_store %arg4[%c0_10, %c0_11], %20 {strides = array<i32>} : memref<2x128xf32, #tpu.memory_space<vmem>>, vector<2x128xf32>,
    return
  }
  func.func @transform_0(%arg0: i32) -> (i32, i32) {
    %c0_i32 = arith.constant 0 : i32
    %c0_i32_0 = arith.constant 0 : i32
    return %arg0, %c0_i32 : i32, i32
  }
  func.func @transform_1(%arg0: i32) -> (i32, i32) {
    %c0_i32 = arith.constant 0 : i32
    %c0_i32_0 = arith.constant 0 : i32
    %c0_i32_1 = arith.constant 0 : i32
    return %c0_i32, %c0_i32_0 : i32, i32
  }
  func.func @transform_2(%arg0: i32) -> (i32, i32) {
    %c0_i32 = arith.constant 0 : i32
    %c0_i32_0 = arith.constant 0 : i32
    %c0_i32_1 = arith.constant 0 : i32
    return %c0_i32, %c0_i32_0 : i32, i32
  }
  func.func @transform_3(%arg0: i32) -> (i32, i32) {
    %c0_i32 = arith.constant 0 : i32
    %c0_i32_0 = arith.constant 0 : i32
    return %arg0, %c0_i32 : i32, i32
  }
}

</mosaic_0001>

<bundles_post_ra>
// kernel: stoc_cnn_forward.1
= control target key start
LH: loop header
LB: loop body
LE: loop exit
PB: predicated region body
PF: predicated region fallthrough
CT: control target
= control target key end

     0   :  { %8 = vsyncpa [#allocation3], 0  ;;  %s491_s0 = inlined_call_operand.vmem [shape: f32[2,64], index: 0, kind: input, shape index: {}]   ;;  %s492_s1 = inlined_call_operand.hbm [shape: f32[65,128], index: 1, kind: input, shape index: {}]   ;;  %s493_s2 = inlined_call_operand.hbm [shape: f32[65,128], index: 2, kind: input, shape index: {}]   ;;  %s494_s3 = inlined_call_operand.hbm [shape: f32[2,128], index: 3, kind: output, shape index: {}]  }
   0x1   :  { %9 = vsyncpa [#allocation6], 0 }
   0x2   :  { %10 = vsyncpa [#allocation4], 0  ;;  %s420_s12 = smov [#allocation2]   ;;  %s348_s16 = scalar_lea.hbm %s492_s1, 1152 }
   0x3   :  { %s18_s13 = sshll.u32 %s420_s12, 4  ;;  %p349_p0 = scmp.ne.s32.totalorder %s492_s1, %s348_s16  ;;  %s19_s13 = int_to_ptr.vmem [resolvable:$true] %s18_s13 }
   0x4   :  { %p352_p1 = scmp.lt.u32.totalorder %s348_s16, %s492_s1 }
   0x6   :  { %p354_p2 = pnand %p352_p1, %p349_p0 }
   0x8   :  { %357 = shalt.err (!%p354_p2)
}
   0x9   :  { %s358_s21 = scalar_lea.vmem %s19_s13, 1152  ;;  %p363_p4 = scmp.lt.s32.totalorder %s19_s13, %s19_s13 }
   0xa   :  { %p359_p3 = scmp.ne.s32.totalorder %s19_s13, %s358_s21  ;;  %p364_p5 = scmp.lt.s32.totalorder %s358_s21, %s358_s21 }
   0xc   :  { %p365_p6 = por %p364_p5, %p363_p4 }
   0xe   :  { %p366_p7 = pnand %p365_p6, %p359_p3 }
  0x10   :  { %369 = shalt.err (!%p366_p7)
}
  0x11   :  { %s421_s22 = smov 128   ;;  %s422_s23 = smov 8  }
  0x12   :  { %24 = dma.hbm_to_vmem [thread:$0]  %s492_s1, 1152, %s19_s13, [#allocation3], %s421_s22, %s421_s22, %s422_s23  }
  0x13   :  { %s423_s26 = smov [#allocation5]   ;;  %s370_s30 = scalar_lea.hbm %s493_s2, 1152 }
  0x14   :  { %s30_s27 = sshll.u32 %s423_s26, 4  ;;  %p371_p8 = scmp.ne.s32.totalorder %s493_s2, %s370_s30  ;;  %s31_s27 = int_to_ptr.vmem [resolvable:$true] %s30_s27 }
  0x15   :  { %p374_p9 = scmp.lt.u32.totalorder %s370_s30, %s493_s2 }
  0x17   :  { %p376_p10 = pnand %p374_p9, %p371_p8 }
  0x19   :  { %379 = shalt.err (!%p376_p10)
}
  0x1a   :  { %s380_s8 = scalar_lea.vmem %s31_s27, 1152  ;;  %p385_p12 = scmp.lt.s32.totalorder %s31_s27, %s31_s27 }
  0x1b   :  { %p381_p11 = scmp.ne.s32.totalorder %s31_s27, %s380_s8  ;;  %p386_p13 = scmp.lt.s32.totalorder %s380_s8, %s380_s8 }
  0x1d   :  { %p387_p0 = por %p386_p13, %p385_p12 }
  0x1f   :  { %p388_p1 = pnand %p387_p0, %p381_p11 }
  0x21   :  { %391 = shalt.err (!%p388_p1)
}
  0x22   :  { %36 = dma.hbm_to_vmem [thread:$0]  %s493_s2, 1152, %s31_s27, [#allocation6], %s421_s22, %s421_s22, %s422_s23  }
  0x23   :  { %414 = dma.done.wait [#allocation3], 1152  }
  0x24   :  { %415 = vsyncadd [#allocation3], 4294966144 }
  0x25   :  { %416 = dma.done.wait [#allocation6], 1152  }
  0x26   :  { %417 = vsyncadd [#allocation6], 4294966144  ;;  %v424_v0 = vmov 0.0|0.0   ;;  %vm425_vm0 = vmmov 0   ;;  %v426_v1 = vmov 0.0   ;;  %v44_v2 = vld [vmem:[#allocation2] sm:$0xff] }
  0x27   :  { %310 = vmatprep.subr.bf16.mxu0 %v424_v0  ;;  %288 = vmatprep.mubr.msk.f32.mxu0 %vm425_vm0, %v426_v1  ;;  %v45_v3 = vld [vmem:[#allocation2 + $0x8] sm:$0xff]  ;;  %v46_v4 = vld [vmem:[#allocation2 + $0x10] sm:$0xff]  ;;  %v47_v6 = vld [vmem:[#allocation2 + $0x18] sm:$0xff]  ;;  %vm57_vm1 = vcmask 523264   ;;  %s428_s11 = smov 112   ;;  %s429_s12 = smov [#allocation7]  }
  0x28   :  { %322 = vmatprep.subr.bf16.mxu1 %v424_v0  ;;  %307 = vmatprep.mubr.msk.f32.mxu1 %vm425_vm0, %v426_v1  ;;  %v311_v5 = vpack.c.bf16 %v45_v3, %v44_v2  ;;  %v314_v7 = vpack.c.bf16 %v47_v6, %v46_v4  ;;  %v48_v8 = vld [vmem:[#allocation2 + $0x20] sm:$0xff]  ;;  %v49_v9 = vld [vmem:[#allocation2 + $0x28] sm:$0xff]  ;;  %v50_v11 = vld [vmem:[#allocation2 + $0x30] sm:$0xff]  ;;  %s239_s13 = sshll.u32 %s429_s12, 4  ;;  %s240_s13 = int_to_ptr.vmem [resolvable:$true] %s239_s13 }
  0x29   :  { %v317_v10 = vpack.c.bf16 %v49_v9, %v48_v8  ;;  %v51_v12 = vld [vmem:[#allocation2 + $0x38] sm:$0xff]  ;;  %v43_v14 = vld [vmem:[%s491_s0] sm:$0x3]  ;;  %v146_v15 = vld [vmem:[#allocation5] sm:$0xff]  ;;  %s427_s0 = smov 120   ;;  %s392_s14 = scalar_lea.vmem %s240_s13, 32 }
  0x2a   :  { %312 = vmatpush3.bf16.msra.mxu0 %v311_v5  ;;  %v320_v13 = vpack.c.bf16 %v51_v12, %v50_v11  ;;  %v147_v16 = vld [vmem:[#allocation5 + $0x8] sm:$0xff]  ;;  %v148_v17 = vld [vmem:[#allocation5 + $0x10] sm:$0xff]  ;;  %v149_v19 = vld [vmem:[#allocation5 + $0x18] sm:$0xff]  ;;  %p393_p2 = scmp.ne.s32.totalorder %s240_s13, %s392_s14  ;;  %p397_p3 = scmp.lt.s32.totalorder %s240_s13, %s240_s13 }
  0x2b   :  { %313 = vmatprep.subr.bf16.mxu0 %v424_v0  ;;  %v323_v18 = vpack.c.bf16 %v147_v16, %v146_v15  ;;  %v326_v20 = vpack.c.bf16 %v149_v19, %v148_v17  ;;  %v150_v21 = vld [vmem:[#allocation5 + $0x20] sm:$0xff]  ;;  %v151_v22 = vld [vmem:[#allocation5 + $0x28] sm:$0xff]  ;;  %v249_v24 = vld [vmem:[#allocation2 + $0x40] ss:$0 sm:$0xff]  ;;  %p398_p4 = scmp.lt.s32.totalorder %s392_s14, %s392_s14 }
  0x2c   :  { %v329_v23 = vpack.c.bf16 %v151_v22, %v150_v21  ;;  %v152_v31 = vld [vmem:[#allocation5 + $0x30] sm:$0xff]  ;;  %v153_v32 = vld [vmem:[#allocation5 + $0x38] sm:$0xff]  ;;  %v252_v39 = vld [vmem:[#allocation5 + $0x40] ss:$0 sm:$0xff] }
  0x2d   :  { %324 = vmatpush3.bf16.msra.mxu1 %v323_v18  ;;  %v332_v33 = vpack.c.bf16 %v153_v32, %v152_v31  ;;  %p399_p5 = por %p398_p4, %p397_p3 }
  0x2e   :  { %315 = vmatpush3.bf16.msra.mxu0 %v314_v7  ;;  %325 = vmatprep.subr.bf16.mxu1 %v424_v0 }
  0x2f   :  { %316 = vmatprep.subr.bf16.mxu0 %v424_v0  ;;  %p400_p6 = pnand %p399_p5, %p393_p2 }
  0x31   :  { %327 = vmatpush3.bf16.msra.mxu1 %v326_v20 }
  0x32   :  { %318 = vmatpush3.bf16.msra.mxu0 %v317_v10  ;;  %328 = vmatprep.subr.bf16.mxu1 %v424_v0 }
  0x33   :  { %319 = vmatprep.subr.bf16.mxu0 %v424_v0 }
  0x35   :  { %330 = vmatpush3.bf16.msra.mxu1 %v329_v23 }
  0x36   :  { %321 = vmatpush3.bf16.msra.mxu0 %v320_v13  ;;  %331 = vmatprep.subr.bf16.mxu1 %v424_v0 }
  0x39   :  { %289 = vmatmul.mubr.msk.f32.vlgmr.msra.gmra.mrb[0].mxu0 %vm57_vm1, %v43_v14  ;;  %333 = vmatpush3.bf16.msra.mxu1 %v332_v33 }
 0x10c   :  { %v127_v25 = vpop.f32.mrb[0].mxu0 }
 0x10d   :  { %v128_v26 = vadd.f32 %v249_v24, %v127_v25  ;;  %v290_v27 = vpop.f32.mrb[1].mxu0 }
 0x10f   :  { %v251_v28 = vmul.f32 -1.442695, %v128_v26 }
 0x111   :  { %344 = vpow2.f32 %v251_v28 }
 0x11b   :  { %v345_v29 = vpop.eup %344 }
 0x11c   :  { %v134_v30 = vadd.f32 1.0, %v345_v29 }
 0x11e   :  { %346 = vrcp.f32 %v134_v30 }
 0x128   :  { %v347_v34 = vpop.eup %346 }
 0x129   :  { %138 = vrot.lane.b32.xlu0 %v347_v34, %s427_s0 }
 0x12d   :  { %142 = vrot.lane.b32.xlu0 %v347_v34, %s428_s11 }
 0x19b   :  { %v139_v35 = vpop.permute.xlu0 %138 }
 0x19c   :  { %v141_v36 = vmax.f32 %v347_v34, %v139_v35 }
 0x19f   :  { %v143_v37 = vpop.permute.xlu0 %142 }
 0x1a0   :  { %v145_v38 = vmax.f32 %v141_v36, %v143_v37 }
 0x1a2   :  { %308 = vmatmul.mubr.msk.f32.vlgmr.msra.gmra.mrb[0].mxu1 %vm57_vm1, %v145_v38 }
 0x275   :  { %v228_v40 = vpop.f32.mrb[0].mxu1 }
 0x276   :  { %v229_v41 = vadd.f32 %v252_v39, %v228_v40  ;;  %v309_v42 = vpop.f32.mrb[1].mxu1 }
 0x278   :  { %232 = vst [vmem:[#allocation7] sm:$0x3] %v229_v41 }
 0x279   :  { %403 = shalt.err (!%p400_p6)
}
 0x27a   :  { %s404_s17 = scalar_lea.hbm %s494_s3, 32 }
 0x27b   :  { %p405_p7 = scmp.ne.s32.totalorder %s494_s3, %s404_s17  ;;  %p408_p8 = scmp.lt.u32.totalorder %s404_s17, %s494_s3 }
 0x27d   :  { %p410_p9 = pnand %p408_p8, %p405_p7 }
 0x27f   :  { %413 = shalt.err (!%p410_p9)
}
 0x280   :  { %242 = dma.vmem_to_hbm [thread:$0]  %s240_s13, 32, %s494_s3, [#allocation4]  }
 0x281   :  { %418 = dma.done.wait [#allocation4], 32  }
 0x282   :  { %419 = vsyncadd [#allocation4], 4294967264 }
 0x283   :  { %246 = vsyncpa [#allocation3], 1 }
 0x284   :  { %247 = vsyncpa [#allocation6], 1 }
 0x285   :  { %248 = vsyncpa [#allocation4], 1 }

</bundles_post_ra>
